<compile_context>
chip_gen: v7x
topology: tpu7x:2x2x1
jax: 0.10.0
libtpu: 0.0.40
codegen_flags: <defaults>
</compile_context>

<pallas_src>
import jax
import jax.numpy as jnp
from jax.experimental import pallas as pl
from jax.experimental.pallas import tpu as pltpu


def _attention_kernel(x_ref, w_ref, out_ref):
    # x_ref:   (TB, S, D)  batch tile of lstm_output (VMEM, native dtype)
    # w_ref:   (1, D)      attention weight row (VMEM, native dtype)
    # out_ref: (TB, D)     context vectors for this batch tile
    x = x_ref[...]                                            # (TB, S, D)
    w = w_ref[0]                                              # (D,)

    # Linear scores: lane (D) reduce with f32 accumulation -> (TB, S).
    scores = jnp.sum(x * w[None, None, :], axis=-1, dtype=jnp.float32)

    # Softmax over the sequence axis (bias omitted: softmax is shift-invariant).
    m = jnp.max(scores, axis=-1, keepdims=True)               # (TB, 1)
    e = jnp.exp(scores - m)                                   # (TB, S)
    denom = jnp.sum(e, axis=-1, keepdims=True)                # (TB, 1)
    inv = pl.reciprocal(denom, approx=True)                   # EUP
    inv = inv * (2.0 - denom * inv)                           # one Newton step
    weights = e * inv                                         # (TB, S) f32

    # Weighted sum over the sequence: (TB, D). Product promotes to f32.
    context = jnp.sum(weights[:, :, None] * x, axis=1)
    out_ref[...] = context.astype(out_ref.dtype)


def _round_up(x, m):
    return ((x + m - 1) // m) * m


def attention_layer(lstm_output, weight, bias=None, *, block_batch=None):
    """Pallas implementation of AttentionLayer.forward.

    Args:
      lstm_output: [B, S, D] with D = 2 * hidden_size.
      weight:      [1, D]  (nn.Linear(D, 1).weight).
      bias:        [1]     (nn.Linear(D, 1).bias). Accepted for API parity but
                   unused: softmax over the sequence axis is invariant to
                   adding a scalar, so the bias cancels exactly.
    Returns:
      Context vector [B, D] in lstm_output.dtype.
    """
    del bias  # exact no-op under the per-row softmax
    B, S, D = lstm_output.shape
    itemsize = jnp.dtype(lstm_output.dtype).itemsize

    try:
        vmem_bytes = pltpu.get_tpu_info().vmem_capacity_bytes
    except Exception:  # conservative fallback (v7x-sized per-TC VMEM)
        vmem_bytes = 64 * 1024 * 1024

    # Per-batch-row VMEM footprint: the (S, D) minor dims pad to (8, 128)
    # tiles in VMEM, so small D still occupies full lanes.
    s_pad = _round_up(S, 8)
    d_pad = _round_up(D, 128)
    row_in = s_pad * d_pad * itemsize        # one row of the x input block
    row_f32 = s_pad * d_pad * 4              # one f32 (TB,S,D)-shaped temporary
    # 2x double-buffered input block + ~3 f32 temporaries (products / accums).
    per_row = 2 * row_in + 3 * row_f32
    budget = int(0.55 * vmem_bytes)

    if block_batch is not None:
        tb = block_batch
    elif B <= 8:
        tb = B                                # one full block, no masking games
    else:
        tb = max(8, ((budget // max(per_row, 1)) // 8) * 8)
        tb = min(tb, 1024)
        # Keep >= ~4 grid steps when the batch allows it (v7x megacore sharding
        # + DMA/compute overlap need more than one step).
        tb = min(tb, max(8, (pl.cdiv(B, 4) // 8) * 8))
        tb = min(tb, (B // 8) * 8)            # tb <= B, multiple of 8
    # TODO(synk): for very large S*D (one row of temporaries exceeds the VMEM
    # budget) add an S-tiling grid axis with an online softmax instead of one
    # (TB, S, D) slab.
    # TODO(synk): when D is far below 128, pack rows into the lane axis for a
    # lane-dense layout instead of accepting masked stores on the (TB, D) output.

    grid = (pl.cdiv(B, tb),)

    w_row = weight.reshape(1, D).astype(lstm_output.dtype)

    vmem_limit = int(min(0.9 * vmem_bytes, 128 * 1024 * 1024))

    return pl.pallas_call(
        _attention_kernel,
        out_shape=jax.ShapeDtypeStruct((B, D), lstm_output.dtype),
        grid_spec=pltpu.PrefetchScalarGridSpec(
            num_scalar_prefetch=0,
            grid=grid,
            in_specs=[
                pl.BlockSpec((tb, S, D), lambda b: (b, 0, 0)),
                pl.BlockSpec((1, D), lambda b: (0, 0)),
            ],
            out_specs=pl.BlockSpec((tb, D), lambda b: (b, 0)),
        ),
        compiler_params=pltpu.CompilerParams(
            # Batch tiles are fully independent -> megacore-shardable.
            dimension_semantics=("parallel",),
            vmem_limit_bytes=vmem_limit,
        ),
    )(lstm_output, w_row)


def attention_layer_ref(lstm_output, weight, bias):
    """Pure-JAX reference matching the PyTorch forward."""
    scores = jnp.einsum("bsd,od->bso", lstm_output, weight) + bias  # (B, S, 1)
    attn = jax.nn.softmax(scores, axis=1)
    return jnp.sum(attn * lstm_output, axis=1)


if __name__ == "__main__":
    key = jax.random.PRNGKey(0)
    k_x, k_w, k_b = jax.random.split(key, 3)

    batch, seq_len, hidden_size = 2, 8, 16
    D = hidden_size * 2  # 32

    lstm_output = jax.random.normal(k_x, (batch, seq_len, D), dtype=jnp.float32)
    # Deterministic "nn.Linear(hidden_size*2, 1)" parameters.
    weight = jax.random.normal(k_w, (1, D), dtype=jnp.float32) * 0.1
    bias = jax.random.normal(k_b, (1,), dtype=jnp.float32) * 0.1

    out = attention_layer(lstm_output, weight, bias)
    out = jax.block_until_ready(out)

    ref = attention_layer_ref(lstm_output, weight, bias)
    assert out.shape == (batch, D)
    assert jnp.allclose(out, ref, atol=1e-4, rtol=1e-4), "mismatch vs reference"

    # Also exercise the multi-step grid with a trailing partial block (no pad).
    b2 = 20
    x2 = jax.random.normal(k_x, (b2, seq_len, D), dtype=jnp.float32)
    out2 = jax.block_until_ready(attention_layer(x2, weight, bias))
    ref2 = attention_layer_ref(x2, weight, bias)
    assert out2.shape == (b2, D)
    assert jnp.allclose(out2, ref2, atol=1e-4, rtol=1e-4), "mismatch (partial block)"

    print("KERNEL_OK")
</pallas_src>

<mosaic_0001>
module attributes {stable_mosaic.version = 11 : i64} {
  func.func @_attention_kernel(%arg0: i32, %arg1: memref<2x8x32xf32, #tpu.memory_space<vmem>>, %arg2: memref<1x32xf32, #tpu.memory_space<vmem>>, %arg3: memref<2x32xf32, #tpu.memory_space<vmem>>) attributes {dimension_semantics = [#tpu.dimension_semantics<parallel>], iteration_bounds = array<i64: 1>, scalar_prefetch = 0 : i64, scratch_operands = 0 : i64, tpu.core_type = #tpu.core_type<tc>, window_params = [{transform_indices = @transform_0, window_bounds = array<i64: 2, 8, 32>}, {pipeline_mode = #tpu.pipeline_mode<synchronous>, transform_indices = @transform_1, window_bounds = array<i64: 1, 32>}, {transform_indices = @transform_2, window_bounds = array<i64: 2, 32>}]} {
    %c0 = arith.constant 0 : index
    %c0_0 = arith.constant 0 : index
    %c0_1 = arith.constant 0 : index
    %0 = vector.load %arg1[%c0, %c0_0, %c0_1] : memref<2x8x32xf32, #tpu.memory_space<vmem>>, vector<2x8x32xf32>
    %c0_2 = arith.constant 0 : index
    %c0_3 = arith.constant 0 : index
    %1 = vector.load %arg2[%c0_2, %c0_3] : memref<1x32xf32, #tpu.memory_space<vmem>>, vector<1x32xf32>
    %2 = vector.shape_cast %1 : vector<1x32xf32> to vector<32xf32>
    %3 = vector.shape_cast %2 : vector<32xf32> to vector<1x1x32xf32>
    %4 = vector.broadcast %3 : vector<1x1x32xf32> to vector<2x8x32xf32>
    %5 = arith.mulf %0, %4 : vector<2x8x32xf32>
    %cst = arith.constant dense<0.000000e+00> : vector<2x8xf32>
    %6 = vector.multi_reduction <add>, %5, %cst [2] : vector<2x8x32xf32> to vector<2x8xf32>
    %cst_4 = arith.constant dense<0xFF800000> : vector<2xf32>
    %7 = vector.multi_reduction <maximumf>, %6, %cst_4 [1] : vector<2x8xf32> to vector<2xf32>
    %8 = vector.shape_cast %7 : vector<2xf32> to vector<2x1xf32>
    %9 = vector.broadcast %8 : vector<2x1xf32> to vector<2x8xf32>
    %10 = arith.subf %6, %9 : vector<2x8xf32>
    %11 = math.exp %10 : vector<2x8xf32>
    %cst_5 = arith.constant dense<0.000000e+00> : vector<2xf32>
    %12 = vector.multi_reduction <add>, %11, %cst_5 [1] : vector<2x8xf32> to vector<2xf32>
    %13 = vector.shape_cast %12 : vector<2xf32> to vector<2x1xf32>
    %14 = tpu.reciprocal %13 {approx = true} : vector<2x1xf32> -> vector<2x1xf32>
    %15 = arith.mulf %13, %14 : vector<2x1xf32>
    %cst_6 = arith.constant 2.000000e+00 : f32
    %16 = vector.broadcast %cst_6 : f32 to vector<2x1xf32>
    %17 = arith.subf %16, %15 : vector<2x1xf32>
    %18 = arith.mulf %14, %17 : vector<2x1xf32>
    %19 = vector.broadcast %18 : vector<2x1xf32> to vector<2x8xf32>
    %20 = arith.mulf %11, %19 : vector<2x8xf32>
    %21 = vector.shape_cast %20 : vector<2x8xf32> to vector<2x8x1xf32>
    %22 = vector.broadcast %21 : vector<2x8x1xf32> to vector<2x8x32xf32>
    %23 = arith.mulf %22, %0 : vector<2x8x32xf32>
    %cst_7 = arith.constant dense<0.000000e+00> : vector<2x32xf32>
    %24 = vector.multi_reduction <add>, %23, %cst_7 [1] : vector<2x8x32xf32> to vector<2x32xf32>
    %c0_8 = arith.constant 0 : index
    %c0_9 = arith.constant 0 : index
    %25 = vector.load %arg3[%c0_8, %c0_9] : memref<2x32xf32, #tpu.memory_space<vmem>>, vector<2x32xf32>
    tpu.vector_store %arg3[%c0_8, %c0_9], %24 {strides = array<i32>} : memref<2x32xf32, #tpu.memory_space<vmem>>, vector<2x32xf32>,
    return
  }
  func.func @transform_0(%arg0: i32) -> (i32, i32, i32) {
    %c0_i32 = arith.constant 0 : i32
    %c0_i32_0 = arith.constant 0 : i32
    %c0_i32_1 = arith.constant 0 : i32
    return %arg0, %c0_i32, %c0_i32_0 : i32, i32, i32
  }
  func.func @transform_1(%arg0: i32) -> (i32, i32) {
    %c0_i32 = arith.constant 0 : i32
    %c0_i32_0 = arith.constant 0 : i32
    %c0_i32_1 = arith.constant 0 : i32
    return %c0_i32, %c0_i32_0 : i32, i32
  }
  func.func @transform_2(%arg0: i32) -> (i32, i32) {
    %c0_i32 = arith.constant 0 : i32
    %c0_i32_0 = arith.constant 0 : i32
    return %arg0, %c0_i32 : i32, i32
  }
}

</mosaic_0001>

<bundles_post_ra>
// kernel: tpu_custom_call.1
= control target key start
LH: loop header
LB: loop body
LE: loop exit
PB: predicated region body
PF: predicated region fallthrough
CT: control target
= control target key end

     0   :  { %7 = vsyncpa [#allocation3], 0  ;;  %s283_s0 = inlined_call_operand.hbm [shape: f32[2,8,32], index: 0, kind: input, shape index: {}]   ;;  %s284_s1 = inlined_call_operand.vmem [shape: f32[1,32], index: 1, kind: input, shape index: {}]   ;;  %s285_s2 = inlined_call_operand.hbm [shape: f32[2,32], index: 2, kind: output, shape index: {}]  }
   0x1   :  { %8 = vsyncpa [#allocation4], 0  ;;  %s227_s9 = smov [#allocation2]   ;;  %s179_s13 = scalar_lea.hbm %s283_s0, 256 }
   0x2   :  { %s14_s10 = sshll.u32 %s227_s9, 4  ;;  %p180_p0 = scmp.ne.s32.totalorder %s283_s0, %s179_s13  ;;  %s15_s10 = int_to_ptr.vmem [resolvable:$true] %s14_s10 }
   0x3   :  { %p183_p1 = scmp.lt.u32.totalorder %s179_s13, %s283_s0 }
   0x5   :  { %p185_p2 = pnand %p183_p1, %p180_p0 }
   0x7   :  { %188 = shalt.err (!%p185_p2)
}
   0x8   :  { %s189_s18 = scalar_lea.vmem %s15_s10, 256  ;;  %p194_p4 = scmp.lt.s32.totalorder %s15_s10, %s15_s10 }
   0x9   :  { %p190_p3 = scmp.ne.s32.totalorder %s15_s10, %s189_s18  ;;  %p195_p5 = scmp.lt.s32.totalorder %s189_s18, %s189_s18 }
   0xb   :  { %p196_p6 = por %p195_p5, %p194_p4 }
   0xd   :  { %p197_p7 = pnand %p196_p6, %p190_p3 }
   0xf   :  { %200 = shalt.err (!%p197_p7)
}
  0x10   :  { %s228_s19 = smov 128   ;;  %s229_s20 = smov 8  }
  0x11   :  { %20 = dma.hbm_to_vmem [thread:$0]  %s283_s0, 256, %s15_s10, [#allocation3], %s228_s19, %s228_s19, %s229_s20  }
  0x12   :  { %223 = dma.done.wait [#allocation3], 256  }
  0x13   :  { %224 = vsyncadd [#allocation3], 4294967040  ;;  %v26_v0 = vld [vmem:[#allocation2] sm:$0xff]  ;;  %vm37_vm0 = vcmask 261120   ;;  %v27_v2 = vld [vmem:[#allocation2 + $0x8] sm:$0xff]  ;;  %v46_v7 = vlaneseq  ;;  %vm56_vm1 = vcmask 1041409  }
  0x14   :  { %v165_v1 = vld [vmem:[%s284_s1] ss:$0 sm:$0xff]  ;;  %vm59_vm2 = vcmask 58368   ;;  %v230_v17 = vmov 0   ;;  %s231_s0 = smov [#allocation5]   ;;  %vm148_vm3 = vcmask 254976  }
  0x15   :  { %v35_v3 = vmul.f32 %v165_v1, %v26_v0  ;;  %v36_v4 = vmul.f32 %v165_v1, %v27_v2  ;;  %v47_v8 = vand.u32 127, %v46_v7  ;;  %v49_v9 = vshrl.u32 %v46_v7, 7  ;;  %172 = vset.pattern.permute.xlu0 %v230_v17  ;;  %171 = vset.pattern.permute.xlu1 %v230_v17  ;;  %s156_s1 = sshll.u32 %s231_s0, 4  ;;  %s157_s1 = int_to_ptr.vmem [resolvable:$true] %s156_s1 }
  0x16   :  { %s201_s25 = scalar_lea.vmem %s157_s1, 32  ;;  %p206_p9 = scmp.lt.s32.totalorder %s157_s1, %s157_s1 }
  0x17   :  { %v38_v5 = vsel %vm37_vm0, %v35_v3, 0.0  ;;  %v41_v6 = vsel %vm37_vm0, %v36_v4, 0.0  ;;  %v50_v11 = vsub.s32 %v47_v8, %v49_v9  ;;  %v66_v18 = vsub.s32 0, %v49_v9  ;;  %p202_p8 = scmp.ne.s32.totalorder %s157_s1, %s201_s25  ;;  %p207_p10 = scmp.lt.s32.totalorder %s201_s25, %s201_s25 }
  0x18   :  { %39 = vadd.xlane.f32.xlu0 %v38_v5  ;;  %v70_v19 = vsub.s32 1, %v49_v9 }
  0x19   :  { %p208_p11 = por %p207_p10, %p206_p9 }
  0x1b   :  { %p209_p12 = pnand %p208_p11, %p202_p8 }
  0x1c   :  { %42 = vadd.xlane.f32.xlu0 %v41_v6 }
  0xa5   :  { %v40_v10 = vpop.xlane.xlu0 %39 }
  0xa6   :  { %v51_v13 = vrot.slane %v40_v10, %v50_v11 }
  0xa9   :  { %v43_v12 = vpop.xlane.xlu0 %42 }
  0xaa   :  { %v55_v14 = vrot.slane %v43_v12, %v50_v11 }
  0xac   :  { %v57_v15 = vsel %vm56_vm1, %v55_v14, %v51_v13 }
  0xad   :  { %v60_v16 = vsel %vm59_vm2, %v57_v15, -inf }
  0xae   :  { %61 = vmax.xlane.f32.xlu1 %v60_v16 }
 0x13b   :  { %v62_v20 = vpop.xlane.xlu1 %61 }
 0x13c   :  { %v67_v21 = vrot.slane %v62_v20, %v66_v18  ;;  %v71_v22 = vrot.slane %v62_v20, %v70_v19 }
 0x13e   :  { %v74_v23 = vsub.f32 %v40_v10, %v67_v21  ;;  %v75_v24 = vsub.f32 %v43_v12, %v71_v22 }
 0x140   :  { %v76_v25 = vmul.f32 1.442695, %v74_v23  ;;  %v78_v26 = vmul.f32 1.442695, %v75_v24 }
 0x142   :  { %173 = vpow2.f32 %v76_v25 }
 0x143   :  { %175 = vpow2.f32 %v78_v26 }
 0x14c   :  { %v174_v27 = vpop.eup %173 }
 0x14d   :  { %v176_v28 = vpop.eup %175  ;;  %83 = vperm.xlu1 %171, %v174_v27  }
 0x14e   :  { %86 = vperm.xlu0 %172, %v176_v28  }
 0x1cc   :  { %v84_v29 = vpop.permute.xlu1 %83 }
 0x1cd   :  { %v87_v30 = vpop.permute.xlu0 %86  ;;  %v91_v31 = vrot.slane %v84_v29, %v50_v11 }
 0x1ce   :  { %v95_v32 = vrot.slane %v87_v30, %v50_v11 }
 0x1d0   :  { %v96_v33 = vsel %vm56_vm1, %v95_v32, %v91_v31 }
 0x1d1   :  { %v98_v34 = vsel %vm59_vm2, %v96_v33, 0.0 }
 0x1d2   :  { %99 = vadd.xlane.f32.xlu1 %v98_v34 }
 0x25f   :  { %v100_v35 = vpop.xlane.xlu1 %99 }
 0x260   :  { %177 = vrcp.f32 %v100_v35 }
 0x26a   :  { %v178_v36 = vpop.eup %177 }
 0x26b   :  { %v102_v37 = vmul.f32 %v178_v36, %v100_v35 }
 0x26d   :  { %v103_v38 = vsub.f32 2.0, %v102_v37 }
 0x26f   :  { %v104_v39 = vmul.f32 %v178_v36, %v103_v38 }
 0x271   :  { %v109_v40 = vrot.slane %v104_v39, %v66_v18  ;;  %v113_v41 = vrot.slane %v104_v39, %v70_v19 }
 0x273   :  { %v116_v42 = vmul.f32 %v174_v27, %v109_v40  ;;  %v117_v43 = vmul.f32 %v176_v28, %v113_v41 }
 0x275   :  { %120 = vperm.xlu0 %172, %v116_v42  }
 0x279   :  { %125 = vperm.xlu0 %172, %v117_v43  }
 0x2f4   :  { %v121_v44 = vpop.permute.xlu0 %120 }
 0x2f5   :  { %v128_v45 = vmul.f32 %v121_v44, %v26_v0 }
 0x2f7   :  { %v130_v46 = vsel %vm37_vm0, %v128_v45, 0.0 }
 0x2f8   :  { %v131_v47 = vrot.slane %v130_v46, 4  ;;  %v126_v48 = vpop.permute.xlu0 %125 }
 0x2f9   :  { %v129_v49 = vmul.f32 %v126_v48, %v27_v2 }
 0x2fa   :  { %v132_v50 = vadd.f32 %v131_v47, %v130_v46 }
 0x2fb   :  { %v137_v51 = vsel %vm37_vm0, %v129_v49, 0.0 }
 0x2fc   :  { %v133_v52 = vrot.slane %v132_v50, 2  ;;  %v138_v53 = vrot.slane %v137_v51, 4 }
 0x2fe   :  { %v134_v54 = vadd.f32 %v133_v52, %v132_v50  ;;  %v139_v55 = vadd.f32 %v138_v53, %v137_v51 }
 0x300   :  { %v140_v56 = vrot.slane %v139_v55, 2  ;;  %v135_v57 = vrot.slane %v134_v54, 1 }
 0x302   :  { %v141_v58 = vadd.f32 %v140_v56, %v139_v55  ;;  %v136_v60 = vadd.f32 %v135_v57, %v134_v54 }
 0x304   :  { %v142_v59 = vrot.slane %v141_v58, 1 }
 0x306   :  { %v143_v61 = vadd.f32 %v142_v59, %v141_v58 }
 0x308   :  { %v146_v62 = vsel %vm56_vm1, %v143_v61, %v136_v60 }
 0x309   :  { %149 = vst.msk [vmem:[#allocation5] sm:$0x3] %vm148_vm3, %v146_v62 }
 0x30a   :  { %212 = shalt.err (!%p209_p12)
}
 0x30b   :  { %s213_s28 = scalar_lea.hbm %s285_s2, 32 }
 0x30c   :  { %p214_p13 = scmp.ne.s32.totalorder %s285_s2, %s213_s28  ;;  %p217_p0 = scmp.lt.u32.totalorder %s213_s28, %s285_s2 }
 0x30e   :  { %p219_p1 = pnand %p217_p0, %p214_p13 }
 0x310   :  { %222 = shalt.err (!%p219_p1)
}
 0x311   :  { %159 = dma.vmem_to_hbm [thread:$0]  %s157_s1, 32, %s285_s2, [#allocation4]  }
 0x312   :  { %225 = dma.done.wait [#allocation4], 32  }
 0x313   :  { %226 = vsyncadd [#allocation4], 4294967264 }
 0x314   :  { %163 = vsyncpa [#allocation3], 1 }
 0x315   :  { %164 = vsyncpa [#allocation4], 1 }

</bundles_post_ra>
